<compile_context>
chip_gen: v7x
topology: tpu7x:2x2x1
jax: 0.10.0
libtpu: 0.0.40
codegen_flags: <defaults>
</compile_context>

<pallas_src>
import jax
import jax.numpy as jnp
import numpy as np
from jax import lax
from jax.experimental import pallas as pl
from jax.experimental.pallas import tpu as pltpu


_DMA_INFLIGHT = 8          # in-flight per-row DMAs in the HBM-gather path


def _round_up(x: int, m: int) -> int:
    return (x + m - 1) // m * m


def _round_down(x: int, m: int) -> int:
    return (x // m) * m


def _vmem_capacity_bytes() -> int:
    """Physical VMEM per TensorCore; used only for path / tile heuristics."""
    try:
        cap = int(getattr(pltpu.get_tpu_info(), "vmem_capacity_bytes", 0))
        if cap > 0:
            return cap
    except Exception:
        pass
    kind = ""
    try:
        kind = jax.devices()[0].device_kind.lower()
    except Exception:
        pass
    # v7x: 64 MiB / TensorCore.  v5e / v6e: 128 MiB (do NOT default to 64 MiB,
    # that silently reroutes valid v5e/v6e shard sizes to the slow path).
    return (64 << 20) if "v7" in kind else (128 << 20)


def _make_vmem_gather_kernel(tok_tile: int, rows_per_group: int, dtype):
    """Gather `tok_tile` embedding rows per grid step from the VMEM-resident shard.

    Rows are gathered in groups of `rows_per_group` (one full packed-sublane
    group) and written with a single aligned (rows_per_group, D) store, so the
    inner loop is not bound by 1-sublane masked vst's.  Invalid / padded tokens
    are encoded as enc==0: the index is clamped to 0 (no OOB read) and the row
    is scaled by 0 (near-free VPU multiply).
    """
    n_groups = tok_tile // rows_per_group

    def kernel(enc_ref, w_ref, out_ref):
        base = pl.program_id(0) * tok_tile

        def group_body(g, carry):
            goff = pl.multiple_of(g * rows_per_group, rows_per_group)
            rows = []
            for r in range(rows_per_group):            # statically unrolled
                enc = enc_ref[base + goff + r]          # SMEM scalar read
                idx = jnp.maximum(enc - 1, 0)           # clamp (enc==0 -> row 0)
                scale = (enc > 0).astype(dtype)         # 0 for invalid / pad
                rows.append(w_ref[pl.ds(idx, 1), :] * scale)
            block = jnp.concatenate(rows, axis=0)       # (rows_per_group, D)
            out_ref[pl.ds(goff, rows_per_group), :] = block.astype(dtype)
            return carry

        lax.fori_loop(0, n_groups, group_body, 0, unroll=min(n_groups, 4))

    return kernel


def _make_dma_gather_kernel(tok_tile: int, d_model: int, dtype):
    """Row gather straight from the HBM-resident weight shard.

    Used when the shard does not fit in VMEM or when n_tok*D << V*D (decode-
    sized batches): HBM traffic is O(n_tok*D) instead of O(V*D).  Up to
    _DMA_INFLIGHT per-row DMAs are kept in flight; invalid / padded tokens are
    zero-filled instead of fetched.
    """

    def kernel(enc_ref, w_hbm, out_ref, sem):
        base = pl.program_id(0) * tok_tile

        def issue_row(t):
            enc = enc_ref[base + t]

            @pl.when(enc > 0)
            def _():
                pltpu.make_async_copy(
                    w_hbm.at[pl.ds(enc - 1, 1), :],
                    out_ref.at[pl.ds(t, 1), :],
                    sem.at[t % _DMA_INFLIGHT],
                ).start()

            @pl.when(enc <= 0)
            def _():
                out_ref[pl.ds(t, 1), :] = jnp.zeros((1, d_model), dtype)

        def wait_row(t):
            enc = enc_ref[base + t]

            @pl.when(enc > 0)
            def _():
                # Dummy descriptor of identical shape: .wait() only needs the
                # semaphore and the transfer size.
                pltpu.make_async_copy(
                    w_hbm.at[pl.ds(0, 1), :],
                    out_ref.at[pl.ds(t, 1), :],
                    sem.at[t % _DMA_INFLIGHT],
                ).wait()

        def main_body(t, carry):
            @pl.when(t >= _DMA_INFLIGHT)
            def _():
                wait_row(t - _DMA_INFLIGHT)      # free the slot we are reusing
            issue_row(t)
            return carry

        lax.fori_loop(0, tok_tile, main_body, 0)

        def drain_body(t, carry):
            wait_row(t)
            return carry

        lax.fori_loop(max(tok_tile - _DMA_INFLIGHT, 0), tok_tile, drain_body, 0)

    return kernel


def embedding_tp_forward(ids, weight_shard, *, force_path=None):
    """Embedding_TP.forward for the rank-0 shard on a single device.

    ids:          (B, S) int token ids over the FULL vocab.
    weight_shard: (per_rank_vocab, D) weight shard of rank 0.
    """
    B, S = ids.shape
    per_rank_vocab, d_model = weight_shard.shape
    dtype = weight_shard.dtype
    esize = jnp.dtype(dtype).itemsize
    n_tok = B * S

    # --- O(n_tok) prologue only: no per-call O(V*D) pad / copy of the table. ---
    flat = ids.reshape(n_tok).astype(jnp.int32)
    valid = jnp.logical_and(flat >= 0, flat < per_rank_vocab)
    # Single encoded SMEM array: id+1 for valid tokens, 0 for invalid tokens
    # (halves SMEM vs. separate index/mask arrays; kernel decodes both).
    enc = jnp.where(valid, flat + 1, 0).astype(jnp.int32)
    # TODO(synk): for very large B*S, deliver ids per-tile (SMEM-blocked spec)
    # instead of one whole-array scalar-prefetch buffer.

    rows_per_group = max(8, 32 // esize)       # 8 f32 / 16 bf16 / 32 int8
    row_bytes = d_model * esize
    w_bytes = per_rank_vocab * row_bytes
    out_bytes = n_tok * row_bytes

    vmem_cap = _vmem_capacity_bytes()
    budget = int(0.8 * vmem_cap)               # headroom for Mosaic scratch

    # Token tile for the resident path: shard single-buffered, output double-buffered.
    spare = budget - w_bytes
    vmem_tok_tile = 0
    if spare > 0:
        vmem_tok_tile = min(512,
                            _round_up(n_tok, rows_per_group),
                            _round_down(spare // (2 * row_bytes), rows_per_group))
    fits_vmem = vmem_tok_tile >= rows_per_group

    if force_path == "vmem":
        assert fits_vmem, "weight shard does not fit in VMEM"
        use_vmem = True
    elif force_path == "dma":
        use_vmem = False
    else:
        # Traffic-based choice: the resident path reads the whole shard once per
        # call; prefer the per-row HBM gather when that read would dominate.
        use_vmem = fits_vmem and w_bytes <= 4 * max(out_bytes, 1)

    if use_vmem:
        tok_tile = vmem_tok_tile
    else:
        tok_tile = min(256, _round_up(n_tok, rows_per_group))
        tok_tile = min(tok_tile,
                       max(_round_down(budget // (2 * row_bytes), rows_per_group),
                           rows_per_group))

    n_tok_pad = _round_up(n_tok, tok_tile)
    enc_pad = enc if n_tok_pad == n_tok else (
        jnp.zeros((n_tok_pad,), jnp.int32).at[:n_tok].set(enc))
    n_tiles = n_tok_pad // tok_tile
    tile_bytes = tok_tile * row_bytes

    if use_vmem:
        needed = w_bytes + 2 * tile_bytes + (2 << 20)
        cost = pl.CostEstimate(flops=0, transcendentals=0,
                               bytes_accessed=int(w_bytes + out_bytes + 4 * n_tok))
        # v7x megacore: "parallel" duplicates the resident shard on both cores;
        # only worth it when the output write dominates the table read.
        semantics = "parallel" if out_bytes >= w_bytes else "arbitrary"
        out = pl.pallas_call(
            _make_vmem_gather_kernel(tok_tile, rows_per_group, dtype),
            out_shape=jax.ShapeDtypeStruct((n_tok_pad, d_model), dtype),
            grid_spec=pltpu.PrefetchScalarGridSpec(
                num_scalar_prefetch=1,                 # encoded ids -> SMEM
                grid=(n_tiles,),
                in_specs=[
                    # Whole weight shard, VMEM-resident, copied in once and
                    # single-buffered (no block_shape => not pipelined).
                    pl.BlockSpec(memory_space=pltpu.MemorySpace.VMEM),
                ],
                out_specs=pl.BlockSpec((tok_tile, d_model),
                                       lambda i, enc_r: (i, 0)),
            ),
            compiler_params=pltpu.CompilerParams(
                dimension_semantics=(semantics,),
                vmem_limit_bytes=int(min(int(0.9 * vmem_cap),
                                         max(needed, 32 << 20)))),
            cost_estimate=cost,
        )(enc_pad, weight_shard)
    else:
        needed = 2 * tile_bytes + (2 << 20)
        cost = pl.CostEstimate(flops=0, transcendentals=0,
                               bytes_accessed=int(2 * out_bytes + 4 * n_tok))
        out = pl.pallas_call(
            _make_dma_gather_kernel(tok_tile, d_model, dtype),
            out_shape=jax.ShapeDtypeStruct((n_tok_pad, d_model), dtype),
            grid_spec=pltpu.PrefetchScalarGridSpec(
                num_scalar_prefetch=1,
                grid=(n_tiles,),
                in_specs=[pl.BlockSpec(memory_space=pl.ANY)],   # weight stays in HBM
                out_specs=pl.BlockSpec((tok_tile, d_model),
                                       lambda i, enc_r: (i, 0)),
                scratch_shapes=[pltpu.SemaphoreType.DMA((_DMA_INFLIGHT,))],
            ),
            compiler_params=pltpu.CompilerParams(
                dimension_semantics=("arbitrary",),
                vmem_limit_bytes=int(min(int(0.9 * vmem_cap),
                                         max(needed, 32 << 20)))),
            cost_estimate=cost,
        )(enc_pad, weight_shard)

    # TODO(synk): dist.all_reduce / dist.barrier over the TP group (group size 1
    # on a single device, rank hard-coded to 0) are identities and are omitted;
    # multi-rank TP would need the rank*per_rank_vocab id offset + a cross-device
    # reduction (make_async_remote_copy ring).
    return out[:n_tok].reshape(B, S, d_model)


def _reference(ids, weight_shard):
    per_rank_vocab, d_model = weight_shard.shape
    flat = ids.reshape(-1)
    mask = (flat >= 0) & (flat < per_rank_vocab)
    safe = jnp.where(mask, flat, 2)
    ref = jnp.take(weight_shard, safe, axis=0) * mask[:, None].astype(weight_shard.dtype)
    return ref.reshape(*ids.shape, d_model)


if __name__ == "__main__":
    key = jax.random.PRNGKey(0)
    k_w, k_ids, k_w2, k_ids2 = jax.random.split(key, 4)

    # ---- Case 1: training-shaped batch -> VMEM-resident gather path. ----
    vocab_size, D = 32, 128
    per_rank_vocab = vocab_size // 2                      # rank-0 shard
    B, S = 2, 8
    full_weight = jax.random.normal(k_w, (vocab_size, D), dtype=jnp.float32)
    weight_shard = full_weight[:per_rank_vocab]
    # ids over the FULL vocab plus negatives so the masking path is exercised.
    ids = jax.random.randint(k_ids, (B, S), -2, vocab_size, dtype=jnp.int32)

    emb = jax.block_until_ready(embedding_tp_forward(ids, weight_shard))
    np.testing.assert_allclose(np.asarray(emb),
                               np.asarray(_reference(ids, weight_shard)),
                               rtol=1e-6, atol=1e-6)

    # ---- Case 2: decode-shaped batch, larger shard -> HBM DMA-gather path. ----
    vocab2, D2 = 512, 128
    per_rank2 = vocab2 // 2
    B2, S2 = 1, 8
    w2 = jax.random.normal(k_w2, (per_rank2, D2), dtype=jnp.float32)
    ids2 = jax.random.randint(k_ids2, (B2, S2), -2, vocab2, dtype=jnp.int32)

    emb2 = jax.block_until_ready(embedding_tp_forward(ids2, w2))
    np.testing.assert_allclose(np.asarray(emb2),
                               np.asarray(_reference(ids2, w2)),
                               rtol=1e-6, atol=1e-6)

    print("KERNEL_OK")
</pallas_src>

<mosaic_0001>
module attributes {stable_mosaic.version = 11 : i64} {
  func.func @kernel(%arg0: i32, %arg1: memref<16xi32, #tpu.memory_space<smem>>, %arg2: memref<16x128xf32, #tpu.memory_space<vmem>>, %arg3: memref<16x128xf32, #tpu.memory_space<vmem>>) attributes {dimension_semantics = [#tpu.dimension_semantics<parallel>], iteration_bounds = array<i64: 1>, scalar_prefetch = 1 : i64, scratch_operands = 0 : i64, tpu.core_type = #tpu.core_type<tc>, window_params = [{pipeline_mode = #tpu.pipeline_mode<synchronous>, transform_indices = @transform_0, window_bounds = array<i64: 16, 128>}, {transform_indices = @transform_1, window_bounds = array<i64: 16, 128>}]} {
    %c16_i32 = arith.constant 16 : i32
    %0 = arith.muli %arg0, %c16_i32 : i32
    %c0_i32 = arith.constant 0 : i32
    %c8_i32 = arith.constant 8 : i32
    %1 = arith.muli %c0_i32, %c8_i32 : i32
    %2 = tpu.assume_multiple %1, 8 : i32
    %3 = arith.addi %0, %2 : i32
    %c0_i32_0 = arith.constant 0 : i32
    %4 = arith.addi %3, %c0_i32_0 : i32
    %5 = arith.index_cast %4 : i32 to index
    %6 = memref.load %arg1[%5] : memref<16xi32, #tpu.memory_space<smem>>
    %c1_i32 = arith.constant 1 : i32
    %7 = arith.subi %6, %c1_i32 : i32
    %c0_i32_1 = arith.constant 0 : i32
    %8 = arith.maxsi %7, %c0_i32_1 : i32
    %c0_i32_2 = arith.constant 0 : i32
    %9 = arith.cmpi sgt, %6, %c0_i32_2 : i32
    %10 = arith.extui %9 : i1 to i32
    %11 = arith.sitofp %10 : i32 to f32
    %12 = arith.index_cast %8 : i32 to index
    %c0 = arith.constant 0 : index
    %13 = vector.load %arg2[%12, %c0] : memref<16x128xf32, #tpu.memory_space<vmem>>, vector<1x128xf32>
    %14 = vector.broadcast %11 : f32 to vector<1x128xf32>
    %15 = arith.mulf %13, %14 : vector<1x128xf32>
    %16 = arith.addi %0, %2 : i32
    %c1_i32_3 = arith.constant 1 : i32
    %17 = arith.addi %16, %c1_i32_3 : i32
    %18 = arith.index_cast %17 : i32 to index
    %19 = memref.load %arg1[%18] : memref<16xi32, #tpu.memory_space<smem>>
    %c1_i32_4 = arith.constant 1 : i32
    %20 = arith.subi %19, %c1_i32_4 : i32
    %c0_i32_5 = arith.constant 0 : i32
    %21 = arith.maxsi %20, %c0_i32_5 : i32
    %c0_i32_6 = arith.constant 0 : i32
    %22 = arith.cmpi sgt, %19, %c0_i32_6 : i32
    %23 = arith.extui %22 : i1 to i32
    %24 = arith.sitofp %23 : i32 to f32
    %25 = arith.index_cast %21 : i32 to index
    %c0_7 = arith.constant 0 : index
    %26 = vector.load %arg2[%25, %c0_7] : memref<16x128xf32, #tpu.memory_space<vmem>>, vector<1x128xf32>
    %27 = vector.broadcast %24 : f32 to vector<1x128xf32>
    %28 = arith.mulf %26, %27 : vector<1x128xf32>
    %29 = arith.addi %0, %2 : i32
    %c2_i32 = arith.constant 2 : i32
    %30 = arith.addi %29, %c2_i32 : i32
    %31 = arith.index_cast %30 : i32 to index
    %32 = memref.load %arg1[%31] : memref<16xi32, #tpu.memory_space<smem>>
    %c1_i32_8 = arith.constant 1 : i32
    %33 = arith.subi %32, %c1_i32_8 : i32
    %c0_i32_9 = arith.constant 0 : i32
    %34 = arith.maxsi %33, %c0_i32_9 : i32
    %c0_i32_10 = arith.constant 0 : i32
    %35 = arith.cmpi sgt, %32, %c0_i32_10 : i32
    %36 = arith.extui %35 : i1 to i32
    %37 = arith.sitofp %36 : i32 to f32
    %38 = arith.index_cast %34 : i32 to index
    %c0_11 = arith.constant 0 : index
    %39 = vector.load %arg2[%38, %c0_11] : memref<16x128xf32, #tpu.memory_space<vmem>>, vector<1x128xf32>
    %40 = vector.broadcast %37 : f32 to vector<1x128xf32>
    %41 = arith.mulf %39, %40 : vector<1x128xf32>
    %42 = arith.addi %0, %2 : i32
    %c3_i32 = arith.constant 3 : i32
    %43 = arith.addi %42, %c3_i32 : i32
    %44 = arith.index_cast %43 : i32 to index
    %45 = memref.load %arg1[%44] : memref<16xi32, #tpu.memory_space<smem>>
    %c1_i32_12 = arith.constant 1 : i32
    %46 = arith.subi %45, %c1_i32_12 : i32
    %c0_i32_13 = arith.constant 0 : i32
    %47 = arith.maxsi %46, %c0_i32_13 : i32
    %c0_i32_14 = arith.constant 0 : i32
    %48 = arith.cmpi sgt, %45, %c0_i32_14 : i32
    %49 = arith.extui %48 : i1 to i32
    %50 = arith.sitofp %49 : i32 to f32
    %51 = arith.index_cast %47 : i32 to index
    %c0_15 = arith.constant 0 : index
    %52 = vector.load %arg2[%51, %c0_15] : memref<16x128xf32, #tpu.memory_space<vmem>>, vector<1x128xf32>
    %53 = vector.broadcast %50 : f32 to vector<1x128xf32>
    %54 = arith.mulf %52, %53 : vector<1x128xf32>
    %55 = arith.addi %0, %2 : i32
    %c4_i32 = arith.constant 4 : i32
    %56 = arith.addi %55, %c4_i32 : i32
    %57 = arith.index_cast %56 : i32 to index
    %58 = memref.load %arg1[%57] : memref<16xi32, #tpu.memory_space<smem>>
    %c1_i32_16 = arith.constant 1 : i32
    %59 = arith.subi %58, %c1_i32_16 : i32
    %c0_i32_17 = arith.constant 0 : i32
    %60 = arith.maxsi %59, %c0_i32_17 : i32
    %c0_i32_18 = arith.constant 0 : i32
    %61 = arith.cmpi sgt, %58, %c0_i32_18 : i32
    %62 = arith.extui %61 : i1 to i32
    %63 = arith.sitofp %62 : i32 to f32
    %64 = arith.index_cast %60 : i32 to index
    %c0_19 = arith.constant 0 : index
    %65 = vector.load %arg2[%64, %c0_19] : memref<16x128xf32, #tpu.memory_space<vmem>>, vector<1x128xf32>
    %66 = vector.broadcast %63 : f32 to vector<1x128xf32>
    %67 = arith.mulf %65, %66 : vector<1x128xf32>
    %68 = arith.addi %0, %2 : i32
    %c5_i32 = arith.constant 5 : i32
    %69 = arith.addi %68, %c5_i32 : i32
    %70 = arith.index_cast %69 : i32 to index
    %71 = memref.load %arg1[%70] : memref<16xi32, #tpu.memory_space<smem>>
    %c1_i32_20 = arith.constant 1 : i32
    %72 = arith.subi %71, %c1_i32_20 : i32
    %c0_i32_21 = arith.constant 0 : i32
    %73 = arith.maxsi %72, %c0_i32_21 : i32
    %c0_i32_22 = arith.constant 0 : i32
    %74 = arith.cmpi sgt, %71, %c0_i32_22 : i32
    %75 = arith.extui %74 : i1 to i32
    %76 = arith.sitofp %75 : i32 to f32
    %77 = arith.index_cast %73 : i32 to index
    %c0_23 = arith.constant 0 : index
    %78 = vector.load %arg2[%77, %c0_23] : memref<16x128xf32, #tpu.memory_space<vmem>>, vector<1x128xf32>
    %79 = vector.broadcast %76 : f32 to vector<1x128xf32>
    %80 = arith.mulf %78, %79 : vector<1x128xf32>
    %81 = arith.addi %0, %2 : i32
    %c6_i32 = arith.constant 6 : i32
    %82 = arith.addi %81, %c6_i32 : i32
    %83 = arith.index_cast %82 : i32 to index
    %84 = memref.load %arg1[%83] : memref<16xi32, #tpu.memory_space<smem>>
    %c1_i32_24 = arith.constant 1 : i32
    %85 = arith.subi %84, %c1_i32_24 : i32
    %c0_i32_25 = arith.constant 0 : i32
    %86 = arith.maxsi %85, %c0_i32_25 : i32
    %c0_i32_26 = arith.constant 0 : i32
    %87 = arith.cmpi sgt, %84, %c0_i32_26 : i32
    %88 = arith.extui %87 : i1 to i32
    %89 = arith.sitofp %88 : i32 to f32
    %90 = arith.index_cast %86 : i32 to index
    %c0_27 = arith.constant 0 : index
    %91 = vector.load %arg2[%90, %c0_27] : memref<16x128xf32, #tpu.memory_space<vmem>>, vector<1x128xf32>
    %92 = vector.broadcast %89 : f32 to vector<1x128xf32>
    %93 = arith.mulf %91, %92 : vector<1x128xf32>
    %94 = arith.addi %0, %2 : i32
    %c7_i32 = arith.constant 7 : i32
    %95 = arith.addi %94, %c7_i32 : i32
    %96 = arith.index_cast %95 : i32 to index
    %97 = memref.load %arg1[%96] : memref<16xi32, #tpu.memory_space<smem>>
    %c1_i32_28 = arith.constant 1 : i32
    %98 = arith.subi %97, %c1_i32_28 : i32
    %c0_i32_29 = arith.constant 0 : i32
    %99 = arith.maxsi %98, %c0_i32_29 : i32
    %c0_i32_30 = arith.constant 0 : i32
    %100 = arith.cmpi sgt, %97, %c0_i32_30 : i32
    %101 = arith.extui %100 : i1 to i32
    %102 = arith.sitofp %101 : i32 to f32
    %103 = arith.index_cast %99 : i32 to index
    %c0_31 = arith.constant 0 : index
    %104 = vector.load %arg2[%103, %c0_31] : memref<16x128xf32, #tpu.memory_space<vmem>>, vector<1x128xf32>
    %105 = vector.broadcast %102 : f32 to vector<1x128xf32>
    %106 = arith.mulf %104, %105 : vector<1x128xf32>
    %107 = tpu.concatenate %15, %28, %41, %54, %67, %80, %93, %106 in 0 : vector<1x128xf32>, vector<1x128xf32>, vector<1x128xf32>, vector<1x128xf32>, vector<1x128xf32>, vector<1x128xf32>, vector<1x128xf32>, vector<1x128xf32> -> vector<8x128xf32>
    %108 = arith.index_cast %2 : i32 to index
    %c0_32 = arith.constant 0 : index
    %109 = vector.load %arg3[%108, %c0_32] : memref<16x128xf32, #tpu.memory_space<vmem>>, vector<8x128xf32>
    tpu.vector_store %arg3[%108, %c0_32], %107 {strides = array<i32>} : memref<16x128xf32, #tpu.memory_space<vmem>>, vector<8x128xf32>,
    %c1_i32_33 = arith.constant 1 : i32
    %c8_i32_34 = arith.constant 8 : i32
    %110 = arith.muli %c1_i32_33, %c8_i32_34 : i32
    %111 = tpu.assume_multiple %110, 8 : i32
    %112 = arith.addi %0, %111 : i32
    %c0_i32_35 = arith.constant 0 : i32
    %113 = arith.addi %112, %c0_i32_35 : i32
    %114 = arith.index_cast %113 : i32 to index
    %115 = memref.load %arg1[%114] : memref<16xi32, #tpu.memory_space<smem>>
    %c1_i32_36 = arith.constant 1 : i32
    %116 = arith.subi %115, %c1_i32_36 : i32
    %c0_i32_37 = arith.constant 0 : i32
    %117 = arith.maxsi %116, %c0_i32_37 : i32
    %c0_i32_38 = arith.constant 0 : i32
    %118 = arith.cmpi sgt, %115, %c0_i32_38 : i32
    %119 = arith.extui %118 : i1 to i32
    %120 = arith.sitofp %119 : i32 to f32
    %121 = arith.index_cast %117 : i32 to index
    %c0_39 = arith.constant 0 : index
    %122 = vector.load %arg2[%121, %c0_39] : memref<16x128xf32, #tpu.memory_space<vmem>>, vector<1x128xf32>
    %123 = vector.broadcast %120 : f32 to vector<1x128xf32>
    %124 = arith.mulf %122, %123 : vector<1x128xf32>
    %125 = arith.addi %0, %111 : i32
    %c1_i32_40 = arith.constant 1 : i32
    %126 = arith.addi %125, %c1_i32_40 : i32
    %127 = arith.index_cast %126 : i32 to index
    %128 = memref.load %arg1[%127] : memref<16xi32, #tpu.memory_space<smem>>
    %c1_i32_41 = arith.constant 1 : i32
    %129 = arith.subi %128, %c1_i32_41 : i32
    %c0_i32_42 = arith.constant 0 : i32
    %130 = arith.maxsi %129, %c0_i32_42 : i32
    %c0_i32_43 = arith.constant 0 : i32
    %131 = arith.cmpi sgt, %128, %c0_i32_43 : i32
    %132 = arith.extui %131 : i1 to i32
    %133 = arith.sitofp %132 : i32 to f32
    %134 = arith.index_cast %130 : i32 to index
    %c0_44 = arith.constant 0 : index
    %135 = vector.load %arg2[%134, %c0_44] : memref<16x128xf32, #tpu.memory_space<vmem>>, vector<1x128xf32>
    %136 = vector.broadcast %133 : f32 to vector<1x128xf32>
    %137 = arith.mulf %135, %136 : vector<1x128xf32>
    %138 = arith.addi %0, %111 : i32
    %c2_i32_45 = arith.constant 2 : i32
    %139 = arith.addi %138, %c2_i32_45 : i32
    %140 = arith.index_cast %139 : i32 to index
    %141 = memref.load %arg1[%140] : memref<16xi32, #tpu.memory_space<smem>>
    %c1_i32_46 = arith.constant 1 : i32
    %142 = arith.subi %141, %c1_i32_46 : i32
    %c0_i32_47 = arith.constant 0 : i32
    %143 = arith.maxsi %142, %c0_i32_47 : i32
    %c0_i32_48 = arith.constant 0 : i32
    %144 = arith.cmpi sgt, %141, %c0_i32_48 : i32
    %145 = arith.extui %144 : i1 to i32
    %146 = arith.sitofp %145 : i32 to f32
    %147 = arith.index_cast %143 : i32 to index
    %c0_49 = arith.constant 0 : index
    %148 = vector.load %arg2[%147, %c0_49] : memref<16x128xf32, #tpu.memory_space<vmem>>, vector<1x128xf32>
    %149 = vector.broadcast %146 : f32 to vector<1x128xf32>
    %150 = arith.mulf %148, %149 : vector<1x128xf32>
    %151 = arith.addi %0, %111 : i32
    %c3_i32_50 = arith.constant 3 : i32
    %152 = arith.addi %151, %c3_i32_50 : i32
    %153 = arith.index_cast %152 : i32 to index
    %154 = memref.load %arg1[%153] : memref<16xi32, #tpu.memory_space<smem>>
    %c1_i32_51 = arith.constant 1 : i32
    %155 = arith.subi %154, %c1_i32_51 : i32
    %c0_i32_52 = arith.constant 0 : i32
    %156 = arith.maxsi %155, %c0_i32_52 : i32
    %c0_i32_53 = arith.constant 0 : i32
    %157 = arith.cmpi sgt, %154, %c0_i32_53 : i32
    %158 = arith.extui %157 : i1 to i32
    %159 = arith.sitofp %158 : i32 to f32
    %160 = arith.index_cast %156 : i32 to index
    %c0_54 = arith.constant 0 : index
    %161 = vector.load %arg2[%160, %c0_54] : memref<16x128xf32, #tpu.memory_space<vmem>>, vector<1x128xf32>
    %162 = vector.broadcast %159 : f32 to vector<1x128xf32>
    %163 = arith.mulf %161, %162 : vector<1x128xf32>
    %164 = arith.addi %0, %111 : i32
    %c4_i32_55 = arith.constant 4 : i32
    %165 = arith.addi %164, %c4_i32_55 : i32
    %166 = arith.index_cast %165 : i32 to index
    %167 = memref.load %arg1[%166] : memref<16xi32, #tpu.memory_space<smem>>
    %c1_i32_56 = arith.constant 1 : i32
    %168 = arith.subi %167, %c1_i32_56 : i32
    %c0_i32_57 = arith.constant 0 : i32
    %169 = arith.maxsi %168, %c0_i32_57 : i32
    %c0_i32_58 = arith.constant 0 : i32
    %170 = arith.cmpi sgt, %167, %c0_i32_58 : i32
    %171 = arith.extui %170 : i1 to i32
    %172 = arith.sitofp %171 : i32 to f32
    %173 = arith.index_cast %169 : i32 to index
    %c0_59 = arith.constant 0 : index
    %174 = vector.load %arg2[%173, %c0_59] : memref<16x128xf32, #tpu.memory_space<vmem>>, vector<1x128xf32>
    %175 = vector.broadcast %172 : f32 to vector<1x128xf32>
    %176 = arith.mulf %174, %175 : vector<1x128xf32>
    %177 = arith.addi %0, %111 : i32
    %c5_i32_60 = arith.constant 5 : i32
    %178 = arith.addi %177, %c5_i32_60 : i32
    %179 = arith.index_cast %178 : i32 to index
    %180 = memref.load %arg1[%179] : memref<16xi32, #tpu.memory_space<smem>>
    %c1_i32_61 = arith.constant 1 : i32
    %181 = arith.subi %180, %c1_i32_61 : i32
    %c0_i32_62 = arith.constant 0 : i32
    %182 = arith.maxsi %181, %c0_i32_62 : i32
    %c0_i32_63 = arith.constant 0 : i32
    %183 = arith.cmpi sgt, %180, %c0_i32_63 : i32
    %184 = arith.extui %183 : i1 to i32
    %185 = arith.sitofp %184 : i32 to f32
    %186 = arith.index_cast %182 : i32 to index
    %c0_64 = arith.constant 0 : index
    %187 = vector.load %arg2[%186, %c0_64] : memref<16x128xf32, #tpu.memory_space<vmem>>, vector<1x128xf32>
    %188 = vector.broadcast %185 : f32 to vector<1x128xf32>
    %189 = arith.mulf %187, %188 : vector<1x128xf32>
    %190 = arith.addi %0, %111 : i32
    %c6_i32_65 = arith.constant 6 : i32
    %191 = arith.addi %190, %c6_i32_65 : i32
    %192 = arith.index_cast %191 : i32 to index
    %193 = memref.load %arg1[%192] : memref<16xi32, #tpu.memory_space<smem>>
    %c1_i32_66 = arith.constant 1 : i32
    %194 = arith.subi %193, %c1_i32_66 : i32
    %c0_i32_67 = arith.constant 0 : i32
    %195 = arith.maxsi %194, %c0_i32_67 : i32
    %c0_i32_68 = arith.constant 0 : i32
    %196 = arith.cmpi sgt, %193, %c0_i32_68 : i32
    %197 = arith.extui %196 : i1 to i32
    %198 = arith.sitofp %197 : i32 to f32
    %199 = arith.index_cast %195 : i32 to index
    %c0_69 = arith.constant 0 : index
    %200 = vector.load %arg2[%199, %c0_69] : memref<16x128xf32, #tpu.memory_space<vmem>>, vector<1x128xf32>
    %201 = vector.broadcast %198 : f32 to vector<1x128xf32>
    %202 = arith.mulf %200, %201 : vector<1x128xf32>
    %203 = arith.addi %0, %111 : i32
    %c7_i32_70 = arith.constant 7 : i32
    %204 = arith.addi %203, %c7_i32_70 : i32
    %205 = arith.index_cast %204 : i32 to index
    %206 = memref.load %arg1[%205] : memref<16xi32, #tpu.memory_space<smem>>
    %c1_i32_71 = arith.constant 1 : i32
    %207 = arith.subi %206, %c1_i32_71 : i32
    %c0_i32_72 = arith.constant 0 : i32
    %208 = arith.maxsi %207, %c0_i32_72 : i32
    %c0_i32_73 = arith.constant 0 : i32
    %209 = arith.cmpi sgt, %206, %c0_i32_73 : i32
    %210 = arith.extui %209 : i1 to i32
    %211 = arith.sitofp %210 : i32 to f32
    %212 = arith.index_cast %208 : i32 to index
    %c0_74 = arith.constant 0 : index
    %213 = vector.load %arg2[%212, %c0_74] : memref<16x128xf32, #tpu.memory_space<vmem>>, vector<1x128xf32>
    %214 = vector.broadcast %211 : f32 to vector<1x128xf32>
    %215 = arith.mulf %213, %214 : vector<1x128xf32>
    %216 = tpu.concatenate %124, %137, %150, %163, %176, %189, %202, %215 in 0 : vector<1x128xf32>, vector<1x128xf32>, vector<1x128xf32>, vector<1x128xf32>, vector<1x128xf32>, vector<1x128xf32>, vector<1x128xf32>, vector<1x128xf32> -> vector<8x128xf32>
    %217 = arith.index_cast %111 : i32 to index
    %c0_75 = arith.constant 0 : index
    %218 = vector.load %arg3[%217, %c0_75] : memref<16x128xf32, #tpu.memory_space<vmem>>, vector<8x128xf32>
    tpu.vector_store %arg3[%217, %c0_75], %216 {strides = array<i32>} : memref<16x128xf32, #tpu.memory_space<vmem>>, vector<8x128xf32>,
    %c2_i32_76 = arith.constant 2 : i32
    return
  }
  func.func @transform_0(%arg0: i32, %arg1: memref<16xi32, #tpu.memory_space<smem>>) -> (i32, i32) {
    %c0_i32 = arith.constant 0 : i32
    %c0_i32_0 = arith.constant 0 : i32
    %c0_i32_1 = arith.constant 0 : i32
    return %c0_i32, %c0_i32_0 : i32, i32
  }
  func.func @transform_1(%arg0: i32, %arg1: memref<16xi32, #tpu.memory_space<smem>>) -> (i32, i32) {
    %c0_i32 = arith.constant 0 : i32
    %c0_i32_0 = arith.constant 0 : i32
    return %arg0, %c0_i32 : i32, i32
  }
}

</mosaic_0001>

<bundles_post_ra>
// kernel: tpu_custom_call.1
= control target key start
LH: loop header
LB: loop body
LE: loop exit
PB: predicated region body
PF: predicated region fallthrough
CT: control target
= control target key end

     0   :  { %s549_s0 = inlined_call_operand.hbm [shape: s32[16], index: 0, kind: input, shape index: {}]   ;;  %s550_s1 = inlined_call_operand.hbm [shape: f32[16,128], index: 1, kind: input, shape index: {}]   ;;  %s551_s2 = inlined_call_operand.hbm [shape: f32[16,128], index: 2, kind: output, shape index: {}]  }
   0x1   :  { %s356_s11 = scalar_lea.hbm %s549_s0, 16 }
   0x2   :  { %p357_p0 = scmp.ne.s32.totalorder %s549_s0, %s356_s11  ;;  %p360_p1 = scmp.lt.u32.totalorder %s356_s11, %s549_s0 }
   0x4   :  { %p362_p2 = pnand %p360_p1, %p357_p0 }
   0x6   :  { %365 = shalt.err (!%p362_p2)  }
   0x7   :  { %s416_s16 = smov [#allocation3]  }
   0x8   :  { %8 = dma.hbm_to_smem %s549_s0, 16, %s416_s16, [#allocation2] }
   0x9   :  { %410 = dma.done.wait [#allocation2], 16 }
   0xa   :  { %411 = vsyncadd [#allocation2], 4294967280 }
   0xb   :  { %10 = sfence }
   0xc   :  { %11 = vsyncpa [#allocation5], 0 }
   0xd   :  { %12 = vsyncpa [#allocation6], 0  ;;  %s417_s19 = smov [#allocation4]   ;;  %s366_s23 = scalar_lea.hbm %s550_s1, 256 }
   0xe   :  { %s18_s20 = sshll.u32 %s417_s19, 4  ;;  %p367_p3 = scmp.ne.s32.totalorder %s550_s1, %s366_s23  ;;  %s19_s20 = int_to_ptr.vmem [resolvable:$true] %s18_s20 }
   0xf   :  { %p370_p4 = scmp.lt.u32.totalorder %s366_s23, %s550_s1 }
  0x11   :  { %p372_p5 = pnand %p370_p4, %p367_p3 }
  0x13   :  { %375 = shalt.err (!%p372_p5)
}
  0x14   :  { %s376_s0 = scalar_lea.vmem %s19_s20, 256  ;;  %p381_p7 = scmp.lt.s32.totalorder %s19_s20, %s19_s20 }
  0x15   :  { %p377_p6 = scmp.ne.s32.totalorder %s19_s20, %s376_s0  ;;  %p382_p8 = scmp.lt.s32.totalorder %s376_s0, %s376_s0 }
  0x17   :  { %p383_p9 = por %p382_p8, %p381_p7 }
  0x19   :  { %p384_p10 = pnand %p383_p9, %p377_p6 }
  0x1b   :  { %387 = shalt.err (!%p384_p10)
}
  0x1c   :  { %s418_s28 = smov 128   ;;  %s419_s29 = smov 8  }
  0x1d   :  { %24 = dma.hbm_to_vmem [thread:$0]  %s550_s1, 256, %s19_s20, [#allocation5], %s418_s28, %s418_s28, %s419_s29  }
  0x1e   :  { %412 = dma.done.wait [#allocation5], 256  }
  0x1f   :  { %413 = vsyncadd [#allocation5], 4294967040  ;;  %s30_s4 = sld [smem:[#allocation3]]  ;;  %s321_s5 = sld [smem:[#allocation3 + $0x1]]  ;;  %vm146_vm0 = vcmask 1040384   ;;  %vm148_vm1 = vcmask 1041408  }
  0x20   :  { %s323_s6 = sld [smem:[#allocation3 + $0x2]]  ;;  %s463_s7 = sld [smem:[#allocation3 + $0x3]]  ;;  %vm150_vm2 = vcmask 1042432   ;;  %vm152_vm3 = vcmask 1043456   ;;  %vm154_vm4 = vcmask 1044480   ;;  %vm156_vm5 = vcmask 1045504  }
  0x21   :  { %s465_s8 = sld [smem:[#allocation3 + $0x4]]  ;;  %s467_s9 = sld [smem:[#allocation3 + $0x5]]  ;;  %vm158_vm6 = vcmask 1046528  }
  0x22   :  { %s469_s10 = sld [smem:[#allocation3 + $0x6]]  ;;  %s471_s11 = sld [smem:[#allocation3 + $0x7]] }
  0x23   :  { %s473_s12 = sld [smem:[#allocation3 + $0x8]]  ;;  %s475_s13 = sld [smem:[#allocation3 + $0x9]] }
  0x24   :  { %s477_s1 = sld [smem:[#allocation3 + $0xa]]  ;;  %s479_s14 = sld [smem:[#allocation3 + $0xb]] }
  0x25   :  { %s320_s15 = sadd.s32 4294967295, %s30_s4  ;;  %p34_p11 = scmp.gt.s32.totalorder %s30_s4, 0 }
  0x26   :  { %p32_p12 = scmp.gt.s32.totalorder %s320_s15, 0  ;;  %s322_s16 = sadd.s32 4294967295, %s321_s5 }
  0x27   :  { %s481_s17 = scalar_select %p34_p11, 1, 0 }
  0x28   :  { %s553_s15 = smov (!%p32_p12, %s320_s15), 0  ;;  %p44_p13 = scmp.gt.s32.totalorder %s322_s16, 0 }
  0x29   :  { %s36_s18 = scvt.s32.f32 %s481_s17  ;;  %p46_p0 = scmp.gt.s32.totalorder %s321_s5, 0 }
  0x2a   :  { %s555_s16 = smov (!%p44_p13, %s322_s16), 0  ;;  %s324_s20 = sadd.s32 4294967295, %s323_s6 }
  0x2b   :  { %s47_s19 = scalar_select %p46_p0, 1, 0  ;;  %v39_v6 = vstv %s36_s18 }
  0x2c   :  { %p56_p1 = scmp.gt.s32.totalorder %s324_s20, 0  ;;  %p58_p2 = scmp.gt.s32.totalorder %s323_s6, 0 }
  0x2d   :  { %s48_s21 = scvt.s32.f32 %s47_s19  ;;  %s326_s22 = sadd.s32 4294967295, %s463_s7 }
  0x2e   :  { %s557_s20 = smov (!%p56_p1, %s324_s20), 0  ;;  %p68_p3 = scmp.gt.s32.totalorder %s326_s22, 0 }
  0x2f   :  { %s59_s23 = scalar_select %p58_p2, 1, 0  ;;  %v51_v1 = vstv %s48_s21 }
  0x30   :  { %s49_s24 = scalar_lea.vmem [#allocation4], %s555_s16  ;;  %p70_p4 = scmp.gt.s32.totalorder %s463_s7, 0 }
  0x31   :  { %v50_v0 = vld [vmem:[%s49_s24] sm:$0x1]  ;;  %s60_s25 = scvt.s32.f32 %s59_s23  ;;  %s559_s22 = smov (!%p68_p3, %s326_s22), 0 }
  0x32   :  { %s71_s26 = scalar_select %p70_p4, 1, 0  ;;  %v52_v2 = vmul.f32 %v51_v1, %v50_v0 }
  0x33   :  { %s61_s27 = scalar_lea.vmem [#allocation4], %s557_s20  ;;  %v63_v4 = vstv %s60_s25  ;;  %s328_s0 = sadd.s32 4294967295, %s465_s8 }
  0x34   :  { %v62_v3 = vld [vmem:[%s61_s27] sm:$0x1]  ;;  %s37_s30 = scalar_lea.vmem [#allocation4], %s553_s15  ;;  %s72_s3 = scvt.s32.f32 %s71_s26  ;;  %v126_v11 = vrot.slane %v52_v2, 7 }
  0x35   :  { %v38_v5 = vld [vmem:[%s37_s30] sm:$0x1]  ;;  %p80_p5 = scmp.gt.s32.totalorder %s328_s0, 0  ;;  %p82_p6 = scmp.gt.s32.totalorder %s465_s8, 0  ;;  %v64_v7 = vmul.f32 %v63_v4, %v62_v3 }
  0x36   :  { %s330_s4 = sadd.s32 4294967295, %s467_s9  ;;  %s73_s5 = scalar_lea.vmem [#allocation4], %s559_s22  ;;  %v75_v9 = vstv %s72_s3  ;;  %v40_v10 = vmul.f32 %v39_v6, %v38_v5 }
  0x37   :  { %v74_v8 = vld [vmem:[%s73_s5] sm:$0x1]  ;;  %s561_s0 = smov (!%p80_p5, %s328_s0), 0  ;;  %p92_p7 = scmp.gt.s32.totalorder %s330_s4, 0  ;;  %v129_v14 = vrot.slane %v64_v7, 6 }
  0x38   :  { %s83_s6 = scalar_select %p82_p6, 1, 0  ;;  %v76_v12 = vmul.f32 %v75_v9, %v74_v8  ;;  %v147_v16 = vsel %vm146_vm0, %v40_v10, %v126_v11 }
  0x39   :  { %s85_s15 = scalar_lea.vmem [#allocation4], %s561_s0  ;;  %p94_p8 = scmp.gt.s32.totalorder %s467_s9, 0  ;;  %v149_v20 = vsel %vm148_vm1, %v147_v16, %v129_v14 }
  0x3a   :  { %s84_s7 = scvt.s32.f32 %s83_s6  ;;  %v86_v13 = vld [vmem:[%s85_s15] sm:$0x1]  ;;  %s563_s4 = smov (!%p92_p7, %s330_s4), 0  ;;  %v132_v19 = vrot.slane %v76_v12, 5 }
  0x3b   :  { %s95_s8 = scalar_select %p94_p8, 1, 0 }
  0x3c   :  { %v87_v15 = vstv %s84_s7  ;;  %s332_s16 = sadd.s32 4294967295, %s469_s10  ;;  %s97_s18 = scalar_lea.vmem [#allocation4], %s563_s4  ;;  %v151_v24 = vsel %vm150_vm2, %v149_v20, %v132_v19 }
  0x3d   :  { %v88_v17 = vmul.f32 %v87_v15, %v86_v13  ;;  %s96_s17 = scvt.s32.f32 %s95_s8  ;;  %v98_v18 = vld [vmem:[%s97_s18] sm:$0x1]  ;;  %p104_p9 = scmp.gt.s32.totalorder %s332_s16, 0 }
  0x3e   :  { %p106_p10 = scmp.gt.s32.totalorder %s469_s10, 0  ;;  %s334_s19 = sadd.s32 4294967295, %s471_s11 }
  0x3f   :  { %v99_v21 = vstv %s96_s17  ;;  %s565_s16 = smov (!%p104_p9, %s332_s16), 0  ;;  %v135_v23 = vrot.slane %v88_v17, 4  ;;  %p116_p11 = scmp.gt.s32.totalorder %s334_s19, 0 }
  0x40   :  { %v100_v22 = vmul.f32 %v99_v21, %v98_v18  ;;  %s107_s9 = scalar_select %p106_p10, 1, 0 }
  0x41   :  { %s109_s21 = scalar_lea.vmem [#allocation4], %s565_s16  ;;  %p118_p12 = scmp.gt.s32.totalorder %s471_s11, 0  ;;  %v153_v28 = vsel %vm152_vm3, %v151_v24, %v135_v23 }
  0x42   :  { %s108_s20 = scvt.s32.f32 %s107_s9  ;;  %v110_v25 = vld [vmem:[%s109_s21] sm:$0x1]  ;;  %s567_s19 = smov (!%p116_p11, %s334_s19), 0  ;;  %v138_v26 = vrot.slane %v100_v22, 3 }
  0x43   :  { %s119_s10 = scalar_select %p118_p12, 1, 0 }
  0x44   :  { %v111_v27 = vstv %s108_s20  ;;  %s336_s22 = sadd.s32 4294967295, %s473_s12  ;;  %s121_s24 = scalar_lea.vmem [#allocation4], %s567_s19  ;;  %v155_v32 = vsel %vm154_vm4, %v153_v28, %v138_v26 }
  0x45   :  { %v112_v29 = vmul.f32 %v111_v27, %v110_v25  ;;  %s120_s23 = scvt.s32.f32 %s119_s10  ;;  %v122_v30 = vld [vmem:[%s121_s24] sm:$0x1]  ;;  %p164_p13 = scmp.gt.s32.totalorder %s336_s22, 0 }
  0x46   :  { %p166_p0 = scmp.gt.s32.totalorder %s473_s12, 0  ;;  %s338_s11 = sadd.s32 4294967295, %s475_s13 }
  0x47   :  { %v141_v31 = vrot.slane %v112_v29, 2  ;;  %v123_v33 = vstv %s120_s23  ;;  %s569_s22 = smov (!%p164_p13, %s336_s22), 0  ;;  %p176_p1 = scmp.gt.s32.totalorder %s338_s11, 0 }
  0x48   :  { %v124_v34 = vmul.f32 %v123_v33, %v122_v30  ;;  %s504_s25 = scalar_select %p166_p0, 1, 0 }
  0x49   :  { %v157_v35 = vsel %vm156_vm5, %v155_v32, %v141_v31  ;;  %p178_p2 = scmp.gt.s32.totalorder %s475_s13, 0  ;;  %s571_s11 = smov (!%p176_p1, %s338_s11), 0 }
  0x4a   :  { %v144_v36 = vrot.slane %v124_v34, 1  ;;  %s340_s26 = sadd.s32 4294967295, %s477_s1  ;;  %p190_p4 = scmp.gt.s32.totalorder %s477_s1, 0 }
  0x4b   :  { %s179_s12 = scalar_select %p178_p2, 1, 0 }
  0x4c   :  { %v159_v37 = vsel %vm158_vm6, %v157_v35, %v144_v36  ;;  %p188_p3 = scmp.gt.s32.totalorder %s340_s26, 0  ;;  %s342_s27 = sadd.s32 4294967295, %s479_s14 }
  0x4d   :  { %160 = vst [vmem:[#allocation7] sm:$0xff] %v159_v37  ;;  %s191_s0 = scalar_select %p190_p4, 1, 0 }
  0x4e   :  { %s573_s26 = smov (!%p188_p3, %s340_s26), 0  ;;  %p200_p5 = scmp.gt.s32.totalorder %s342_s27, 0 }
  0x4f   :  { %s180_s30 = scvt.s32.f32 %s179_s12  ;;  %p202_p6 = scmp.gt.s32.totalorder %s479_s14, 0 }
  0x50   :  { %s575_s27 = smov (!%p200_p5, %s342_s27), 0  ;;  %s343_s4 = sld [smem:[#allocation3 + $0xc]] }
  0x51   :  { %s203_s3 = scalar_select %p202_p6, 1, 0  ;;  %v183_v39 = vstv %s180_s30 }
  0x52   :  { %s192_s13 = scvt.s32.f32 %s191_s0  ;;  %s513_s5 = sld [smem:[#allocation3 + $0xd]] }
  0x53   :  { %s168_s6 = scvt.s32.f32 %s504_s25  ;;  %s181_s7 = scalar_lea.vmem [#allocation4], %s571_s11 }
  0x54   :  { %v182_v38 = vld [vmem:[%s181_s7] sm:$0x1]  ;;  %s204_s15 = scvt.s32.f32 %s203_s3  ;;  %s193_s1 = scalar_lea.vmem [#allocation4], %s573_s26  ;;  %v195_v42 = vstv %s192_s13 }
  0x55   :  { %v184_v40 = vmul.f32 %v183_v39, %v182_v38  ;;  %v194_v41 = vld [vmem:[%s193_s1] sm:$0x1]  ;;  %s516_s8 = sld [smem:[#allocation3 + $0xe]]  ;;  %s518_s14 = sld [smem:[#allocation3 + $0xf]]  ;;  %v171_v44 = vstv %s168_s6 }
  0x56   :  { %s169_s16 = scalar_lea.vmem [#allocation4], %s569_s22  ;;  %s344_s17 = sadd.s32 4294967295, %s343_s4  ;;  %v196_v45 = vmul.f32 %v195_v42, %v194_v41  ;;  %v207_v47 = vstv %s204_s15 }
  0x57   :  { %v170_v43 = vld [vmem:[%s169_s16] sm:$0x1]  ;;  %p214_p7 = scmp.gt.s32.totalorder %s343_s4, 0  ;;  %p212_p8 = scmp.gt.s32.totalorder %s344_s17, 0  ;;  %v258_v49 = vrot.slane %v184_v40, 7 }
  0x58   :  { %s346_s18 = sadd.s32 4294967295, %s513_s5  ;;  %s205_s19 = scalar_lea.vmem [#allocation4], %s575_s27  ;;  %v172_v48 = vmul.f32 %v171_v44, %v170_v43  ;;  %v261_v53 = vrot.slane %v196_v45, 6 }
  0x59   :  { %v206_v46 = vld [vmem:[%s205_s19] sm:$0x1]  ;;  %s215_s9 = scalar_select %p214_p7, 1, 0 }
  0x5a   :  { %s577_s17 = smov (!%p212_p8, %s344_s17), 0  ;;  %p224_p9 = scmp.gt.s32.totalorder %s346_s18, 0  ;;  %v208_v50 = vmul.f32 %v207_v47, %v206_v46  ;;  %v278_v54 = vsel %vm146_vm0, %v172_v48, %v258_v49 }
  0x5b   :  { %s216_s20 = scvt.s32.f32 %s215_s9  ;;  %p226_p10 = scmp.gt.s32.totalorder %s513_s5, 0  ;;  %v279_v58 = vsel %vm148_vm1, %v278_v54, %v261_v53 }
  0x5c   :  { %s217_s21 = scalar_lea.vmem [#allocation4], %s577_s17  ;;  %s579_s18 = smov (!%p224_p9, %s346_s18), 0  ;;  %v264_v57 = vrot.slane %v208_v50, 5 }
  0x5d   :  { %v218_v51 = vld [vmem:[%s217_s21] sm:$0x1]  ;;  %v219_v52 = vstv %s216_s20  ;;  %s227_s10 = scalar_select %p226_p10, 1, 0 }
  0x5e   :  { %v220_v55 = vmul.f32 %v219_v52, %v218_v51  ;;  %s348_s22 = sadd.s32 4294967295, %s516_s8  ;;  %s229_s24 = scalar_lea.vmem [#allocation4], %s579_s18  ;;  %v280_v62 = vsel %vm150_vm2, %v279_v58, %v264_v57 }
  0x5f   :  { %s228_s23 = scvt.s32.f32 %s227_s10  ;;  %v230_v56 = vld [vmem:[%s229_s24] sm:$0x1]  ;;  %p236_p11 = scmp.gt.s32.totalorder %s348_s22, 0 }
  0x60   :  { %p238_p12 = scmp.gt.s32.totalorder %s516_s8, 0  ;;  %s350_s11 = sadd.s32 4294967295, %s518_s14  ;;  %v267_v61 = vrot.slane %v220_v55, 4 }
  0x61   :  { %v231_v59 = vstv %s228_s23  ;;  %s581_s22 = smov (!%p236_p11, %s348_s22), 0  ;;  %p248_p13 = scmp.gt.s32.totalorder %s350_s11, 0 }
  0x62   :  { %v232_v60 = vmul.f32 %v231_v59, %v230_v56  ;;  %s239_s25 = scalar_select %p238_p12, 1, 0  ;;  %v281_v2 = vsel %vm152_vm3, %v280_v62, %v267_v61 }
  0x63   :  { %s241_s26 = scalar_lea.vmem [#allocation4], %s581_s22  ;;  %p250_p0 = scmp.gt.s32.totalorder %s518_s14, 0 }
  0x64   :  { %s240_s12 = scvt.s32.f32 %s239_s25  ;;  %v242_v63 = vld [vmem:[%s241_s26] sm:$0x1]  ;;  %s583_s11 = smov (!%p248_p13, %s350_s11), 0  ;;  %v270_v0 = vrot.slane %v232_v60, 3 }
  0x65   :  { %s251_s27 = scalar_select %p250_p0, 1, 0 }
  0x66   :  { %v243_v1 = vstv %s240_s12  ;;  %s253_s30 = scalar_lea.vmem [#allocation4], %s583_s11  ;;  %v282_v6 = vsel %vm154_vm4, %v281_v2, %v270_v0  ;;  %s420_s3 = smov [#allocation7]  }
  0x67   :  { %v244_v3 = vmul.f32 %v243_v1, %v242_v63  ;;  %s252_s0 = scvt.s32.f32 %s251_s27  ;;  %v254_v4 = vld [vmem:[%s253_s30] sm:$0x1]  ;;  %s292_s4 = sshll.u32 %s420_s3, 4  ;;  %s293_s4 = int_to_ptr.vmem [resolvable:$true] %s292_s4 }
  0x68   :  { %s388_s13 = scalar_lea.vmem %s293_s4, 256  ;;  %p393_p2 = scmp.lt.s32.totalorder %s293_s4, %s293_s4 }
  0x69   :  { %v273_v5 = vrot.slane %v244_v3, 2  ;;  %v255_v7 = vstv %s252_s0  ;;  %p389_p1 = scmp.ne.s32.totalorder %s293_s4, %s388_s13  ;;  %p394_p3 = scmp.lt.s32.totalorder %s388_s13, %s388_s13 }
  0x6a   :  { %v256_v8 = vmul.f32 %v255_v7, %v254_v4 }
  0x6b   :  { %v283_v9 = vsel %vm156_vm5, %v282_v6, %v273_v5  ;;  %p395_p4 = por %p394_p3, %p393_p2 }
  0x6c   :  { %v276_v10 = vrot.slane %v256_v8, 1 }
  0x6d   :  { %p396_p5 = pnand %p395_p4, %p389_p1 }
  0x6e   :  { %v284_v11 = vsel %vm158_vm6, %v283_v9, %v276_v10 }
  0x6f   :  { %286 = vst [vmem:[#allocation7 + $0x8] sm:$0xff] %v284_v11 }
  0x70   :  { %399 = shalt.err (!%p396_p5)
}
  0x71   :  { %s400_s7 = scalar_lea.hbm %s551_s2, 256 }
  0x72   :  { %p401_p6 = scmp.ne.s32.totalorder %s551_s2, %s400_s7  ;;  %p404_p7 = scmp.lt.u32.totalorder %s400_s7, %s551_s2 }
  0x74   :  { %p406_p8 = pnand %p404_p7, %p401_p6 }
  0x76   :  { %409 = shalt.err (!%p406_p8)
}
  0x77   :  { %298 = dma.vmem_to_hbm [thread:$0]  %s293_s4, 256, %s551_s2, [#allocation6], %s418_s28, %s418_s28, %s419_s29  }
  0x78   :  { %414 = dma.done.wait [#allocation6], 256  }
  0x79   :  { %415 = vsyncadd [#allocation6], 4294967040 }
  0x7a   :  { %302 = vsyncpa [#allocation5], 1 }
  0x7b   :  { %303 = vsyncpa [#allocation6], 1 }

</bundles_post_ra>
